<compile_context>
chip_gen: v6e
topology: v6e:2x2x1
jax: 0.10.0
libtpu: 0.0.40
codegen_flags: <defaults>
</compile_context>

<pallas_src>
import jax
import jax.numpy as jnp
from jax.experimental import pallas as pl
from jax.experimental.pallas import tpu as pltpu

BN_EPS = 1e-5


def _round_up(n, m):
    return -(-n // m) * m


def _make_kernel(d_pad, c_pad):
    """Single fused BN + ReLU + (fc1∘fc2) kernel over lane-padded blocks."""

    def kernel(xin_ref, pp_ref, w_ref, out_ref):
        x = xin_ref[...]                                    # (B, d_pad) f32
        gamma = pp_ref[0:1, :d_pad]                         # (1, d_pad)
        beta = pp_ref[1:2, :d_pad]                          # (1, d_pad)
        b12 = pp_ref[2:3, :c_pad]                           # (1, c_pad)

        # Training-mode BatchNorm1d: one-pass stats, folded scale/shift.
        mean = jnp.mean(x, axis=0, keepdims=True)           # (1, d_pad)
        mean_sq = jnp.mean(x * x, axis=0, keepdims=True)    # (1, d_pad)
        var = jnp.maximum(mean_sq - mean * mean, 0.0)       # biased batch var
        scale = gamma * jax.lax.rsqrt(var + BN_EPS)         # EUP rsqrt
        shift = beta - mean * scale
        h = jnp.maximum(x * scale + shift, 0.0)             # BN + ReLU: 1 mul + 1 add

        # Fused fc1∘fc2: one MXU pass, lane-dense unmasked store.
        y = jnp.dot(h, w_ref[...], preferred_element_type=jnp.float32) + b12
        out_ref[...] = y.astype(out_ref.dtype)

    return kernel


def make_forward(params, input_dim, feature_dim):
    """One-time parameter fusion / packing; returns a jitted forward fn.

    The returned forward(x, feature) yields the lane-padded (B, c_pad) output;
    real classes live in columns [:num_classes] (slice at the consumer).
    """
    D = input_dim + feature_dim
    w1 = params["fc1_w"].astype(jnp.float32)   # (H, D)
    b1 = params["fc1_b"].astype(jnp.float32)   # (H,)
    w2 = params["fc2_w"].astype(jnp.float32)   # (C, H)
    b2 = params["fc2_b"].astype(jnp.float32)   # (C,)
    C = w2.shape[0]

    d_pad = _round_up(max(D, 1), 128)
    c_pad = _round_up(max(C, 1), 128)
    pack_w = max(d_pad, c_pad)

    # Exact fusion of the two back-to-back Linears (no nonlinearity between).
    w12 = w1.T @ w2.T                          # (D, C)
    b12 = b1 @ w2.T + b2                       # (C,)

    # Zero-padded fused weight: padded feature rows / class columns contribute 0.
    w12_p = jnp.zeros((d_pad, c_pad), jnp.float32).at[:D, :C].set(w12)

    # Packed parameter block (sublane-aligned 8 rows):
    #   row 0 = gamma, row 1 = beta, row 2 = fused bias, rows 3..7 = 0.
    # Padded gamma/beta are exactly 0 so padded lanes normalize to exactly 0.
    gamma = params["bn_gamma"].astype(jnp.float32)
    beta = params["bn_beta"].astype(jnp.float32)
    pp = jnp.zeros((8, pack_w), jnp.float32)
    pp = pp.at[0, :D].set(gamma).at[1, :D].set(beta).at[2, :C].set(b12)

    kernel = _make_kernel(d_pad, c_pad)
    vmem = pl.BlockSpec(memory_space=pltpu.MemorySpace.VMEM)

    @jax.jit
    def forward(x, feature):
        B = x.shape[0]
        # Pack x | feature | zero-pad into one lane-aligned block (fused by XLA).
        xin = jnp.zeros((B, d_pad), jnp.float32)
        xin = xin.at[:, :input_dim].set(x.astype(jnp.float32))
        if feature_dim > 0:
            xin = xin.at[:, input_dim:D].set(feature.astype(jnp.float32))
        return pl.pallas_call(
            kernel,
            out_shape=jax.ShapeDtypeStruct((B, c_pad), jnp.float32),
            in_specs=[vmem, vmem, vmem],
            out_specs=vmem,
        )(xin, pp, w12_p)

    return forward, C


def _reference_forward(x, feature, params):
    """Pure-JAX reference matching the PyTorch module (training-mode BN)."""
    xc = jnp.concatenate((x, feature), axis=1)
    mean = jnp.mean(xc, axis=0, keepdims=True)
    var = jnp.mean((xc - mean) ** 2, axis=0, keepdims=True)
    h = (xc - mean) / jnp.sqrt(var + BN_EPS)
    h = h * params["bn_gamma"][None, :] + params["bn_beta"][None, :]
    h = jnp.maximum(h, 0.0)
    h = h @ params["fc1_w"].T + params["fc1_b"][None, :]
    return h @ params["fc2_w"].T + params["fc2_b"][None, :]


def init_params(key, input_dim, feature_dim, num_classes, hidden=50):
    """Deterministic synthetic parameters (shapes from the module's __init__)."""
    D = input_dim + feature_dim
    k = jax.random.split(key, 6)
    return {
        "bn_gamma": 1.0 + 0.05 * jax.random.normal(k[0], (D,), jnp.float32),
        "bn_beta": 0.05 * jax.random.normal(k[1], (D,), jnp.float32),
        "fc1_w": 0.1 * jax.random.normal(k[2], (hidden, D), jnp.float32),
        "fc1_b": 0.1 * jax.random.normal(k[3], (hidden,), jnp.float32),
        "fc2_w": 0.1 * jax.random.normal(k[4], (num_classes, hidden), jnp.float32),
        "fc2_b": 0.1 * jax.random.normal(k[5], (num_classes,), jnp.float32),
    }


if __name__ == "__main__":
    batch, input_dim, feature_dim, num_classes = 8, 40, 8, 10

    key = jax.random.PRNGKey(0)
    kx, kf, kp = jax.random.split(key, 3)
    x = jax.random.normal(kx, (batch, input_dim), jnp.float32)
    feature = jax.random.normal(kf, (batch, feature_dim), jnp.float32)
    params = init_params(kp, input_dim, feature_dim, num_classes)

    forward, C = make_forward(params, input_dim, feature_dim)   # one-time prep
    out_padded = jax.block_until_ready(forward(x, feature))     # (B, 128) lane-padded

    out = out_padded[:, :C]                                     # consumer-side slice
    ref = jax.block_until_ready(_reference_forward(x, feature, params))
    assert out.shape == (batch, num_classes)
    assert jnp.allclose(out, ref, atol=1e-4, rtol=1e-4), "mismatch vs reference"
    # Padded class columns must be exactly zero (padding never leaks).
    assert jnp.all(out_padded[:, C:] == 0.0)

    print("KERNEL_OK")
</pallas_src>

<mosaic_0001>
module attributes {stable_mosaic.version = 11 : i64} {
  func.func @kernel(%arg0: memref<8x128xf32, #tpu.memory_space<vmem>>, %arg1: memref<8x128xf32, #tpu.memory_space<vmem>>, %arg2: memref<128x128xf32, #tpu.memory_space<vmem>>, %arg3: memref<8x128xf32, #tpu.memory_space<vmem>>) attributes {dimension_semantics = [], scalar_prefetch = 0 : i64, scratch_operands = 0 : i64, tpu.core_type = #tpu.core_type<tc>} {
    %c0 = arith.constant 0 : index
    %c0_0 = arith.constant 0 : index
    %0 = vector.load %arg0[%c0, %c0_0] : memref<8x128xf32, #tpu.memory_space<vmem>>, vector<8x128xf32>
    %c0_1 = arith.constant 0 : index
    %c0_2 = arith.constant 0 : index
    %1 = vector.load %arg1[%c0_1, %c0_2] : memref<8x128xf32, #tpu.memory_space<vmem>>, vector<1x128xf32>
    %c1 = arith.constant 1 : index
    %c0_3 = arith.constant 0 : index
    %2 = vector.load %arg1[%c1, %c0_3] : memref<8x128xf32, #tpu.memory_space<vmem>>, vector<1x128xf32>
    %c2 = arith.constant 2 : index
    %c0_4 = arith.constant 0 : index
    %3 = vector.load %arg1[%c2, %c0_4] : memref<8x128xf32, #tpu.memory_space<vmem>>, vector<1x128xf32>
    %cst = arith.constant dense<0.000000e+00> : vector<128xf32>
    %4 = vector.multi_reduction <add>, %0, %cst [0] : vector<8x128xf32> to vector<128xf32>
    %5 = vector.shape_cast %4 : vector<128xf32> to vector<1x128xf32>
    %cst_5 = arith.constant 8.000000e+00 : f32
    %6 = vector.broadcast %cst_5 : f32 to vector<1x128xf32>
    %7 = arith.divf %5, %6 : vector<1x128xf32>
    %8 = arith.mulf %0, %0 : vector<8x128xf32>
    %cst_6 = arith.constant dense<0.000000e+00> : vector<128xf32>
    %9 = vector.multi_reduction <add>, %8, %cst_6 [0] : vector<8x128xf32> to vector<128xf32>
    %10 = vector.shape_cast %9 : vector<128xf32> to vector<1x128xf32>
    %cst_7 = arith.constant 8.000000e+00 : f32
    %11 = vector.broadcast %cst_7 : f32 to vector<1x128xf32>
    %12 = arith.divf %10, %11 : vector<1x128xf32>
    %13 = arith.mulf %7, %7 : vector<1x128xf32>
    %14 = arith.subf %12, %13 : vector<1x128xf32>
    %cst_8 = arith.constant 0.000000e+00 : f32
    %15 = vector.broadcast %cst_8 : f32 to vector<1x128xf32>
    %16 = arith.maximumf %14, %15 : vector<1x128xf32>
    %cst_9 = arith.constant 9.99999974E-6 : f32
    %17 = vector.broadcast %cst_9 : f32 to vector<1x128xf32>
    %18 = arith.addf %16, %17 : vector<1x128xf32>
    %19 = math.rsqrt %18 : vector<1x128xf32>
    %20 = arith.mulf %1, %19 : vector<1x128xf32>
    %21 = arith.mulf %7, %20 : vector<1x128xf32>
    %22 = arith.subf %2, %21 : vector<1x128xf32>
    %23 = vector.broadcast %20 : vector<1x128xf32> to vector<8x128xf32>
    %24 = arith.mulf %0, %23 : vector<8x128xf32>
    %25 = vector.broadcast %22 : vector<1x128xf32> to vector<8x128xf32>
    %26 = arith.addf %24, %25 : vector<8x128xf32>
    %cst_10 = arith.constant 0.000000e+00 : f32
    %27 = vector.broadcast %cst_10 : f32 to vector<8x128xf32>
    %28 = arith.maximumf %26, %27 : vector<8x128xf32>
    %c0_11 = arith.constant 0 : index
    %c0_12 = arith.constant 0 : index
    %29 = vector.load %arg2[%c0_11, %c0_12] : memref<128x128xf32, #tpu.memory_space<vmem>>, vector<128x128xf32>
    %cst_13 = arith.constant dense<0.000000e+00> : vector<8x128xf32>
    %30 = tpu.matmul %28, %29, %cst_13 {dimension_numbers = #tpu.dot_dimension_numbers<[1], [0], [0], [1], [0, 0, 1, 1], [], []>} : vector<8x128xf32>, vector<128x128xf32>, vector<8x128xf32> -> vector<8x128xf32>
    %31 = vector.broadcast %3 : vector<1x128xf32> to vector<8x128xf32>
    %32 = arith.addf %30, %31 : vector<8x128xf32>
    %c0_14 = arith.constant 0 : index
    %c0_15 = arith.constant 0 : index
    %33 = vector.load %arg3[%c0_14, %c0_15] : memref<8x128xf32, #tpu.memory_space<vmem>>, vector<8x128xf32>
    tpu.vector_store %arg3[%c0_14, %c0_15], %32 {strides = array<i32>} : memref<8x128xf32, #tpu.memory_space<vmem>>, vector<8x128xf32>,
    return
  }
}

</mosaic_0001>

<bundles_post_ra>
// kernel: forward.1
= control target key start
LH: loop header
LB: loop body
LE: loop exit
PB: predicated region body
PF: predicated region fallthrough
CT: control target
= control target key end

     0   :  { %8 = vsyncpa [#allocation3], 0  ;;  %s347_s0 = inlined_call_operand.vmem [shape: f32[8,128], index: 0, kind: input, shape index: {}]   ;;  %s348_s1 = inlined_call_operand.vmem [shape: f32[8,128], index: 1, kind: input, shape index: {}]   ;;  %s349_s2 = inlined_call_operand.hbm [shape: f32[128,128], index: 2, kind: input, shape index: {}]   ;;  %s350_s3 = inlined_call_operand.hbm [shape: f32[8,128], index: 3, kind: output, shape index: {}]  }
   0x1   :  { %9 = vsyncpa [#allocation4], 0  ;;  %s279_s12 = smov [#allocation2]  }
   0x2   :  { %s19_s13 = sshll.u32 %s279_s12, 4  ;;  %s20_s13 = int_to_ptr.vmem [resolvable:$true] %s19_s13 }
   0x3   :  { %s243_s14 = scalar_lea.vmem %s20_s13, 2048  ;;  %p248_p1 = scmp.lt.s32.totalorder %s20_s13, %s20_s13 }
   0x4   :  { %p244_p0 = scmp.ne.s32.totalorder %s20_s13, %s243_s14  ;;  %p249_p2 = scmp.lt.s32.totalorder %s243_s14, %s243_s14 }
   0x6   :  { %p250_p3 = por %p249_p2, %p248_p1 }
   0x8   :  { %p251_p4 = pnand %p250_p3, %p244_p0 }
   0xa   :  { %254 = shalt.err (!%p251_p4)
}
   0xb   :  { %s280_s15 = smov 128   ;;  %s281_s16 = smov 8  }
   0xc   :  { %25 = dma.hbm_to_vmem [thread:$0]  %s349_s2, 2048, %s20_s13, [#allocation3], %s280_s15, %s280_s15, %s281_s16  }
   0xd   :  { %275 = dma.done.wait [#allocation3], 2048  }
   0xe   :  { %276 = vsyncadd [#allocation3], 4294965248  ;;  %v282_v0 = vmov 0.0   ;;  %vm283_vm0 = vmmov 0   ;;  %v83_v1 = vld [vmem:[#allocation2 + $0x78] sm:$0xff]  ;;  %v82_v2 = vld [vmem:[#allocation2 + $0x70] sm:$0xff]  ;;  %v57_v37 = vlaneseq }
   0xf   :  { %192 = vmatprep.subr.mxu0 %v282_v0  ;;  %224 = vmatprep.mubr.msk.f32.mxu0 %vm283_vm0, %v282_v0  ;;  %v81_v3 = vld [vmem:[#allocation2 + $0x68] sm:$0xff]  ;;  %v80_v4 = vld [vmem:[#allocation2 + $0x60] sm:$0xff]  ;;  %v79_v6 = vld [vmem:[#allocation2 + $0x58] sm:$0xff]  ;;  %s284_s25 = smov [#allocation5]  }
  0x10   :  { %193 = vmatpush3.msra.mxu0 %v83_v1  ;;  %v315_v5 = vld [vmem:[%s347_s0] sm:$0xff]  ;;  %v78_v9 = vld [vmem:[#allocation2 + $0x50] sm:$0xff]  ;;  %v77_v12 = vld [vmem:[#allocation2 + $0x48] sm:$0xff]  ;;  %v58_v38 = vshrl.u32 %v57_v37, 7  ;;  %s165_s26 = sshll.u32 %s284_s25, 4  ;;  %s166_s26 = int_to_ptr.vmem [resolvable:$true] %s165_s26 }
  0x11   :  { %194 = vmatprep.subr.mxu0 %v282_v0  ;;  %v33_v7 = vrot.slane %v315_v5, 4  ;;  %v41_v8 = vmul.f32 %v315_v5, %v315_v5  ;;  %v76_v15 = vld [vmem:[#allocation2 + $0x40] sm:$0xff]  ;;  %v75_v18 = vld [vmem:[#allocation2 + $0x38] sm:$0xff]  ;;  %v74_v21 = vld [vmem:[#allocation2 + $0x30] sm:$0xff]  ;;  %s255_s27 = scalar_lea.vmem %s166_s26, 128  ;;  %p260_p6 = scmp.lt.s32.totalorder %s166_s26, %s166_s26 }
  0x12   :  { %195 = vmatpush3.msra.mxu0 %v82_v2  ;;  %v73_v24 = vld [vmem:[#allocation2 + $0x28] sm:$0xff]  ;;  %v72_v27 = vld [vmem:[#allocation2 + $0x20] sm:$0xff]  ;;  %v71_v30 = vld [vmem:[#allocation2 + $0x18] sm:$0xff]  ;;  %v59_v40 = vsub.s32 0, %v58_v38  ;;  %p256_p5 = scmp.ne.s32.totalorder %s166_s26, %s255_s27  ;;  %p261_p7 = scmp.lt.s32.totalorder %s255_s27, %s255_s27 }
  0x13   :  { %196 = vmatprep.subr.mxu0 %v282_v0  ;;  %v34_v10 = vadd.f32 %v33_v7, %v315_v5  ;;  %v42_v11 = vrot.slane %v41_v8, 4  ;;  %v70_v32 = vld [vmem:[#allocation2 + $0x10] sm:$0xff]  ;;  %v69_v34 = vld [vmem:[#allocation2 + $0x8] sm:$0xff]  ;;  %v68_v36 = vld [vmem:[#allocation2] sm:$0xff] }
  0x14   :  { %197 = vmatpush3.msra.mxu0 %v81_v3  ;;  %v30_v39 = vld [vmem:[%s348_s1] sm:$0x1]  ;;  %v31_v43 = vld [vmem:[%s348_s1 + $0x1] sm:$0x1]  ;;  %v174_v51 = vld [vmem:[%s348_s1 + $0x2] ss:$0 sm:$0xff]  ;;  %p262_p8 = por %p261_p7, %p260_p6 }
  0x15   :  { %198 = vmatprep.subr.mxu0 %v282_v0  ;;  %v35_v13 = vrot.slane %v34_v10, 2  ;;  %v43_v14 = vadd.f32 %v42_v11, %v41_v8 }
  0x16   :  { %199 = vmatpush3.msra.mxu0 %v80_v4  ;;  %p263_p9 = pnand %p262_p8, %p256_p5 }
  0x17   :  { %200 = vmatprep.subr.mxu0 %v282_v0  ;;  %v36_v16 = vadd.f32 %v35_v13, %v34_v10  ;;  %v44_v17 = vrot.slane %v43_v14, 2 }
  0x18   :  { %201 = vmatpush3.msra.mxu0 %v79_v6 }
  0x19   :  { %202 = vmatprep.subr.mxu0 %v282_v0  ;;  %v37_v19 = vrot.slane %v36_v16, 1  ;;  %v45_v20 = vadd.f32 %v44_v17, %v43_v14 }
  0x1a   :  { %203 = vmatpush3.msra.mxu0 %v78_v9 }
  0x1b   :  { %204 = vmatprep.subr.mxu0 %v282_v0  ;;  %v38_v22 = vadd.f32 %v37_v19, %v36_v16  ;;  %v46_v23 = vrot.slane %v45_v20, 1 }
  0x1c   :  { %205 = vmatpush3.msra.mxu0 %v77_v12 }
  0x1d   :  { %206 = vmatprep.subr.mxu0 %v282_v0  ;;  %v40_v25 = vmul.f32 0.125, %v38_v22  ;;  %v47_v26 = vadd.f32 %v46_v23, %v45_v20 }
  0x1e   :  { %207 = vmatpush3.msra.mxu0 %v76_v15 }
  0x1f   :  { %208 = vmatprep.subr.mxu0 %v282_v0  ;;  %v48_v28 = vmul.f32 0.125, %v47_v26  ;;  %v49_v29 = vmul.f32 %v40_v25, %v40_v25 }
  0x20   :  { %209 = vmatpush3.msra.mxu0 %v75_v18 }
  0x21   :  { %210 = vmatprep.subr.mxu0 %v282_v0  ;;  %v50_v31 = vsub.f32 %v48_v28, %v49_v29 }
  0x22   :  { %211 = vmatpush3.msra.mxu0 %v74_v21 }
  0x23   :  { %212 = vmatprep.subr.mxu0 %v282_v0  ;;  %v51_v33 = vmax.f32 %v50_v31, 0.0 }
  0x24   :  { %213 = vmatpush3.msra.mxu0 %v73_v24 }
  0x25   :  { %214 = vmatprep.subr.mxu0 %v282_v0  ;;  %v52_v35 = vadd.f32 1e-05, %v51_v33 }
  0x26   :  { %215 = vmatpush3.msra.mxu0 %v72_v27 }
  0x27   :  { %216 = vmatprep.subr.mxu0 %v282_v0  ;;  %233 = vrsqrt.f32 %v52_v35 }
  0x28   :  { %217 = vmatpush3.msra.mxu0 %v71_v30 }
  0x29   :  { %218 = vmatprep.subr.mxu0 %v282_v0 }
  0x2a   :  { %219 = vmatpush3.msra.mxu0 %v70_v32 }
  0x2b   :  { %220 = vmatprep.subr.mxu0 %v282_v0 }
  0x2c   :  { %221 = vmatpush3.msra.mxu0 %v69_v34 }
  0x2d   :  { %222 = vmatprep.subr.mxu0 %v282_v0 }
  0x2e   :  { %223 = vmatpush3.msra.mxu0 %v68_v36 }
  0x34   :  { %v234_v41 = vpop.eup %233 }
  0x35   :  { %v54_v42 = vmul.f32 %v234_v41, %v30_v39 }
  0x37   :  { %v55_v44 = vmul.f32 %v54_v42, %v40_v25  ;;  %v60_v45 = vrot.slane %v54_v42, %v59_v40 }
  0x39   :  { %v56_v46 = vsub.f32 %v31_v43, %v55_v44  ;;  %v61_v47 = vmul.f32 %v60_v45, %v315_v5 }
  0x3b   :  { %v65_v48 = vrot.slane %v56_v46, %v59_v40 }
  0x3d   :  { %v66_v49 = vadd.f32 %v65_v48, %v61_v47 }
  0x3f   :  { %v67_v50 = vmax.f32 %v66_v49, 0.0 }
  0x41   :  { %225 = vmatmul.mubr.f32.vlgmr.msra.gmra.mxu0 %v67_v50 }
 0x101   :  { %v154_v52 = vpop.f32.mrf.mxu0 }
 0x102   :  { %v155_v53 = vadd.f32 %v174_v51, %v154_v52 }
 0x103   :  { %v226_v54 = vpop.f32.mrf.mxu0 }
 0x104   :  { %158 = vst [vmem:[#allocation5] sm:$0xff] %v155_v53 }
 0x105   :  { %266 = shalt.err (!%p263_p9)
}
 0x106   :  { %168 = dma.vmem_to_hbm [thread:$0]  %s166_s26, 128, %s350_s3, [#allocation4]  }
 0x107   :  { %277 = dma.done.wait [#allocation4], 128  }
 0x108   :  { %278 = vsyncadd [#allocation4], 4294967168 }
 0x109   :  { %172 = vsyncpa [#allocation3], 1 }
 0x10a   :  { %173 = vsyncpa [#allocation4], 1 }

</bundles_post_ra>
